<compile_context>
chip_gen: v7x
topology: tpu7x:2x2x1
jax: 0.10.0
libtpu: 0.0.40
codegen_flags: <defaults>
</compile_context>

<pallas_src>
import functools

import jax
import jax.numpy as jnp
from jax.experimental import pallas as pl
from jax.experimental.pallas import tpu as pltpu


def _linear_block_kernel(seed_ref, x_ref, w_ref, gamma_ref, beta_ref, o_ref,
                         *, eps, drop_p):
    # ---- Linear: x @ W on the MXU (bf16 inputs, f32 accumulate). Bias omitted:
    # it is cancelled exactly by the batch-mean subtraction below. ----
    y = jnp.dot(x_ref[...], w_ref[...],
                preferred_element_type=jnp.float32)          # [N, TILE_F] f32

    # ---- BatchNorm1d (training: batch statistics, biased variance, one pass) ----
    inv_n = 1.0 / y.shape[0]
    mean = jnp.sum(y, axis=0, keepdims=True) * inv_n          # [1, TILE_F]
    msq = jnp.sum(y * y, axis=0, keepdims=True) * inv_n       # [1, TILE_F]
    var = jnp.maximum(msq - mean * mean, 0.0)
    z = (y - mean) * jax.lax.rsqrt(var + eps)
    z = z * gamma_ref[...] + beta_ref[...]

    # ---- ReLU ----
    z = jnp.maximum(z, 0.0)

    # ---- Dropout (inverted, training mode), in-kernel hash PRNG ----
    if drop_p > 0.0:
        pid = pl.program_id(0).astype(jnp.uint32)
        seed = seed_ref[0].astype(jnp.uint32) + pid * jnp.uint32(0x9E3779B9)
        row = jax.lax.broadcasted_iota(jnp.uint32, z.shape, 0)
        col = jax.lax.broadcasted_iota(jnp.uint32, z.shape, 1)
        # lowbias32-style integer hash over (row, col, seed) -> uniform uint32 bits.
        h = row * jnp.uint32(0x0001B873) + col * jnp.uint32(0x85EBCA6B) + seed
        h = h ^ (h >> 16)
        h = h * jnp.uint32(0x7FEB352D)
        h = h ^ (h >> 15)
        h = h * jnp.uint32(0x846CA68B)
        h = h ^ (h >> 16)
        # keep element iff bits >= p * 2^32  (P(keep) = 1 - p); fold 1/(1-p) into select.
        threshold = jnp.uint32(min(int(round(drop_p * 2.0 ** 32)), 2 ** 32 - 1))
        scale = jnp.float32(1.0 / (1.0 - drop_p))
        z = z * jnp.where(h >= threshold, scale, jnp.float32(0.0))

    o_ref[...] = z.astype(o_ref.dtype)


def linear_block_forward(x, weight, bias, gamma, beta, *, eps=1e-5,
                         drop_p=0.1, seed=0):
    """x: [N, F_in] float32; weight: [F_out, F_in] (torch layout); returns [N, F_out] f32."""
    del bias  # Cancelled by the training-mode BN batch-mean subtraction (dead compute).

    n, f_in = x.shape
    f_out = weight.shape[0]

    # Pad F_out up to a multiple of 128 (lane-dense stores) and pick a 128-granular tile.
    f_out_pad = ((f_out + 127) // 128) * 128
    if f_out_pad % 512 == 0:
        tile_f = 512
    elif f_out_pad % 256 == 0:
        tile_f = 256
    else:
        tile_f = 128
    pad = f_out_pad - f_out

    # bf16 MXU operands; BN/ReLU/dropout epilogue stays f32.
    x_bf = x.astype(jnp.bfloat16)
    w_t = weight.T.astype(jnp.bfloat16)                       # [F_in, F_out]
    if pad:
        w_t = jnp.pad(w_t, ((0, 0), (0, pad)))
        gamma_p = jnp.pad(gamma, (0, pad), constant_values=1.0)
        beta_p = jnp.pad(beta, (0, pad))
    else:
        gamma_p, beta_p = gamma, beta
    g2 = gamma_p.reshape(1, f_out_pad).astype(jnp.float32)
    be2 = beta_p.reshape(1, f_out_pad).astype(jnp.float32)
    seed_arr = jnp.asarray([seed], dtype=jnp.int32)

    kernel = functools.partial(_linear_block_kernel, eps=eps, drop_p=drop_p)

    out = pl.pallas_call(
        kernel,
        out_shape=jax.ShapeDtypeStruct((n, f_out_pad), jnp.float32),
        grid_spec=pltpu.PrefetchScalarGridSpec(
            num_scalar_prefetch=1,                            # seed -> SMEM
            grid=(f_out_pad // tile_f,),                      # tile F_out only (BN over full N)
            in_specs=[
                pl.BlockSpec((n, f_in), lambda j, seed: (0, 0)),       # x (replicated)
                pl.BlockSpec((f_in, tile_f), lambda j, seed: (0, j)),  # W^T tile
                pl.BlockSpec((1, tile_f), lambda j, seed: (0, j)),     # gamma tile
                pl.BlockSpec((1, tile_f), lambda j, seed: (0, j)),     # beta tile
            ],
            out_specs=pl.BlockSpec((n, tile_f), lambda j, seed: (0, j)),
        ),
        compiler_params=pltpu.CompilerParams(
            dimension_semantics=("parallel",)),               # megacore-shardable F_out axis
    )(seed_arr, x_bf, w_t, g2, be2)

    return out[:, :f_out]


if __name__ == "__main__":
    # Small shapes consistent with the module: batch=8, in_features=32, out_features=64
    N, F_IN, F_OUT = 8, 32, 64
    DROPOUT_P = 0.1

    key = jax.random.PRNGKey(0)
    kx, kw, kb = jax.random.split(key, 3)

    x = jax.random.normal(kx, (N, F_IN), dtype=jnp.float32)

    # Deterministic parameter init (torch-style uniform bound for Linear)
    bound = 1.0 / (F_IN ** 0.5)
    weight = jax.random.uniform(kw, (F_OUT, F_IN), minval=-bound, maxval=bound,
                                dtype=jnp.float32)
    bias = jax.random.uniform(kb, (F_OUT,), minval=-bound, maxval=bound,
                              dtype=jnp.float32)
    gamma = jnp.ones((F_OUT,), dtype=jnp.float32)   # BatchNorm1d weight
    beta = jnp.zeros((F_OUT,), dtype=jnp.float32)   # BatchNorm1d bias

    out = linear_block_forward(x, weight, bias, gamma, beta,
                               eps=1e-5, drop_p=DROPOUT_P, seed=42)
    jax.block_until_ready(out)

    assert out.shape == (N, F_OUT)
    assert out.dtype == jnp.float32
    assert bool(jnp.all(jnp.isfinite(out)))
    assert bool(jnp.all(out >= 0.0))  # ReLU * non-negative dropout scale
    print("KERNEL_OK")
</pallas_src>

<mosaic_0001>
module attributes {stable_mosaic.version = 11 : i64} {
  func.func @_linear_block_kernel(%arg0: i32, %arg1: memref<1xi32, #tpu.memory_space<smem>>, %arg2: memref<8x32xbf16, #tpu.memory_space<vmem>>, %arg3: memref<32x128xbf16, #tpu.memory_space<vmem>>, %arg4: memref<1x128xf32, #tpu.memory_space<vmem>>, %arg5: memref<1x128xf32, #tpu.memory_space<vmem>>, %arg6: memref<8x128xf32, #tpu.memory_space<vmem>>) attributes {dimension_semantics = [#tpu.dimension_semantics<parallel>], iteration_bounds = array<i64: 1>, scalar_prefetch = 1 : i64, scratch_operands = 0 : i64, tpu.core_type = #tpu.core_type<tc>, window_params = [{pipeline_mode = #tpu.pipeline_mode<synchronous>, transform_indices = @transform_0, window_bounds = array<i64: 8, 32>}, {transform_indices = @transform_1, window_bounds = array<i64: 32, 128>}, {transform_indices = @transform_2, window_bounds = array<i64: 1, 128>}, {transform_indices = @transform_3, window_bounds = array<i64: 1, 128>}, {transform_indices = @transform_4, window_bounds = array<i64: 8, 128>}]} {
    %c0 = arith.constant 0 : index
    %c0_0 = arith.constant 0 : index
    %0 = vector.load %arg2[%c0, %c0_0] : memref<8x32xbf16, #tpu.memory_space<vmem>>, vector<8x32xbf16>
    %c0_1 = arith.constant 0 : index
    %c0_2 = arith.constant 0 : index
    %1 = vector.load %arg3[%c0_1, %c0_2] : memref<32x128xbf16, #tpu.memory_space<vmem>>, vector<32x128xbf16>
    %cst = arith.constant dense<0.000000e+00> : vector<8x128xf32>
    %2 = tpu.matmul %0, %1, %cst {dimension_numbers = #tpu.dot_dimension_numbers<[1], [0], [0], [1], [0, 0, 1, 1], [], []>} : vector<8x32xbf16>, vector<32x128xbf16>, vector<8x128xf32> -> vector<8x128xf32>
    %cst_3 = arith.constant dense<0.000000e+00> : vector<128xf32>
    %3 = vector.multi_reduction <add>, %2, %cst_3 [0] : vector<8x128xf32> to vector<128xf32>
    %4 = vector.shape_cast %3 : vector<128xf32> to vector<1x128xf32>
    %cst_4 = arith.constant 1.250000e-01 : f32
    %5 = vector.broadcast %cst_4 : f32 to vector<1x128xf32>
    %6 = arith.mulf %4, %5 : vector<1x128xf32>
    %7 = arith.mulf %2, %2 : vector<8x128xf32>
    %cst_5 = arith.constant dense<0.000000e+00> : vector<128xf32>
    %8 = vector.multi_reduction <add>, %7, %cst_5 [0] : vector<8x128xf32> to vector<128xf32>
    %9 = vector.shape_cast %8 : vector<128xf32> to vector<1x128xf32>
    %cst_6 = arith.constant 1.250000e-01 : f32
    %10 = vector.broadcast %cst_6 : f32 to vector<1x128xf32>
    %11 = arith.mulf %9, %10 : vector<1x128xf32>
    %12 = arith.mulf %6, %6 : vector<1x128xf32>
    %13 = arith.subf %11, %12 : vector<1x128xf32>
    %cst_7 = arith.constant 0.000000e+00 : f32
    %14 = vector.broadcast %cst_7 : f32 to vector<1x128xf32>
    %15 = arith.maximumf %13, %14 : vector<1x128xf32>
    %16 = vector.broadcast %6 : vector<1x128xf32> to vector<8x128xf32>
    %17 = arith.subf %2, %16 : vector<8x128xf32>
    %cst_8 = arith.constant 9.99999974E-6 : f32
    %18 = vector.broadcast %cst_8 : f32 to vector<1x128xf32>
    %19 = arith.addf %15, %18 : vector<1x128xf32>
    %20 = math.rsqrt %19 : vector<1x128xf32>
    %21 = vector.broadcast %20 : vector<1x128xf32> to vector<8x128xf32>
    %22 = arith.mulf %17, %21 : vector<8x128xf32>
    %c0_9 = arith.constant 0 : index
    %c0_10 = arith.constant 0 : index
    %23 = vector.load %arg4[%c0_9, %c0_10] : memref<1x128xf32, #tpu.memory_space<vmem>>, vector<1x128xf32>
    %24 = vector.broadcast %23 : vector<1x128xf32> to vector<8x128xf32>
    %25 = arith.mulf %22, %24 : vector<8x128xf32>
    %c0_11 = arith.constant 0 : index
    %c0_12 = arith.constant 0 : index
    %26 = vector.load %arg5[%c0_11, %c0_12] : memref<1x128xf32, #tpu.memory_space<vmem>>, vector<1x128xf32>
    %27 = vector.broadcast %26 : vector<1x128xf32> to vector<8x128xf32>
    %28 = arith.addf %25, %27 : vector<8x128xf32>
    %cst_13 = arith.constant 0.000000e+00 : f32
    %29 = vector.broadcast %cst_13 : f32 to vector<8x128xf32>
    %30 = arith.maximumf %28, %29 : vector<8x128xf32>
    %c0_14 = arith.constant 0 : index
    %31 = memref.load %arg1[%c0_14] : memref<1xi32, #tpu.memory_space<smem>>
    %c-1640531527_i32 = arith.constant -1640531527 : i32
    %32 = arith.muli %arg0, %c-1640531527_i32 : i32
    %33 = arith.addi %31, %32 : i32
    %34 = tpu.iota {dimensions = array<i32: 0>} : vector<8x128xi32>
    %35 = tpu.iota {dimensions = array<i32: 1>} : vector<8x128xi32>
    %c112755_i32 = arith.constant 112755 : i32
    %36 = vector.broadcast %c112755_i32 : i32 to vector<8x128xi32>
    %37 = arith.muli %34, %36 : vector<8x128xi32>
    %c-2048144789_i32 = arith.constant -2048144789 : i32
    %38 = vector.broadcast %c-2048144789_i32 : i32 to vector<8x128xi32>
    %39 = arith.muli %35, %38 : vector<8x128xi32>
    %40 = arith.addi %37, %39 : vector<8x128xi32>
    %41 = vector.broadcast %33 : i32 to vector<8x128xi32>
    %42 = arith.addi %40, %41 : vector<8x128xi32>
    %c16_i32 = arith.constant 16 : i32
    %43 = vector.broadcast %c16_i32 : i32 to vector<8x128xi32>
    %44 = arith.shrui %42, %43 : vector<8x128xi32>
    %45 = arith.xori %42, %44 : vector<8x128xi32>
    %c2146121005_i32 = arith.constant 2146121005 : i32
    %46 = vector.broadcast %c2146121005_i32 : i32 to vector<8x128xi32>
    %47 = arith.muli %45, %46 : vector<8x128xi32>
    %c15_i32 = arith.constant 15 : i32
    %48 = vector.broadcast %c15_i32 : i32 to vector<8x128xi32>
    %49 = arith.shrui %47, %48 : vector<8x128xi32>
    %50 = arith.xori %47, %49 : vector<8x128xi32>
    %c-2073254261_i32 = arith.constant -2073254261 : i32
    %51 = vector.broadcast %c-2073254261_i32 : i32 to vector<8x128xi32>
    %52 = arith.muli %50, %51 : vector<8x128xi32>
    %c16_i32_15 = arith.constant 16 : i32
    %53 = vector.broadcast %c16_i32_15 : i32 to vector<8x128xi32>
    %54 = arith.shrui %52, %53 : vector<8x128xi32>
    %55 = arith.xori %52, %54 : vector<8x128xi32>
    %c429496730_i32 = arith.constant 429496730 : i32
    %56 = vector.broadcast %c429496730_i32 : i32 to vector<8x128xi32>
    %57 = arith.cmpi uge, %55, %56 : vector<8x128xi32>
    %cst_16 = arith.constant 1.11111116 : f32
    %cst_17 = arith.constant 0.000000e+00 : f32
    %58 = vector.broadcast %cst_16 : f32 to vector<8x128xf32>
    %59 = vector.broadcast %cst_17 : f32 to vector<8x128xf32>
    %60 = arith.select %57, %58, %59 : vector<8x128xi1>, vector<8x128xf32>
    %61 = arith.mulf %30, %60 : vector<8x128xf32>
    %c0_18 = arith.constant 0 : index
    %c0_19 = arith.constant 0 : index
    %62 = vector.load %arg6[%c0_18, %c0_19] : memref<8x128xf32, #tpu.memory_space<vmem>>, vector<8x128xf32>
    tpu.vector_store %arg6[%c0_18, %c0_19], %61 {strides = array<i32>} : memref<8x128xf32, #tpu.memory_space<vmem>>, vector<8x128xf32>,
    return
  }
  func.func @transform_0(%arg0: i32, %arg1: memref<1xi32, #tpu.memory_space<smem>>) -> (i32, i32) {
    %c0_i32 = arith.constant 0 : i32
    %c0_i32_0 = arith.constant 0 : i32
    %c0_i32_1 = arith.constant 0 : i32
    return %c0_i32, %c0_i32_0 : i32, i32
  }
  func.func @transform_1(%arg0: i32, %arg1: memref<1xi32, #tpu.memory_space<smem>>) -> (i32, i32) {
    %c0_i32 = arith.constant 0 : i32
    %c0_i32_0 = arith.constant 0 : i32
    return %c0_i32, %arg0 : i32, i32
  }
  func.func @transform_2(%arg0: i32, %arg1: memref<1xi32, #tpu.memory_space<smem>>) -> (i32, i32) {
    %c0_i32 = arith.constant 0 : i32
    %c0_i32_0 = arith.constant 0 : i32
    return %c0_i32, %arg0 : i32, i32
  }
  func.func @transform_3(%arg0: i32, %arg1: memref<1xi32, #tpu.memory_space<smem>>) -> (i32, i32) {
    %c0_i32 = arith.constant 0 : i32
    %c0_i32_0 = arith.constant 0 : i32
    return %c0_i32, %arg0 : i32, i32
  }
  func.func @transform_4(%arg0: i32, %arg1: memref<1xi32, #tpu.memory_space<smem>>) -> (i32, i32) {
    %c0_i32 = arith.constant 0 : i32
    %c0_i32_0 = arith.constant 0 : i32
    return %c0_i32, %arg0 : i32, i32
  }
}

</mosaic_0001>

<bundles_post_ra>
// kernel: tpu_custom_call.1
= control target key start
LH: loop header
LB: loop body
LE: loop exit
PB: predicated region body
PF: predicated region fallthrough
CT: control target
= control target key end

     0   :  { %11 = vsyncpa [#allocation5], 0  ;;  %s375_s0 = inlined_call_operand.<no memory space> [shape: s32[1], index: 0, kind: input, shape index: {}]   ;;  %s376_s1 = inlined_call_operand.hbm [shape: bf16[8,32], index: 1, kind: input, shape index: {}]   ;;  %s377_s2 = inlined_call_operand.hbm [shape: bf16[32,128], index: 2, kind: input, shape index: {}]   ;;  %s378_s3 = inlined_call_operand.vmem [shape: f32[1,128], index: 3, kind: input, shape index: {}]   ;;  %s379_s4 = inlined_call_operand.vmem [shape: f32[1,128], index: 4, kind: input, shape index: {}]   ;;  %s380_s5 = inlined_call_operand.hbm [shape: f32[8,128], index: 5, kind: output, shape index: {}]  }
   0x1   :  { %12 = vsyncpa [#allocation8], 0 }
   0x2   :  { %13 = vsyncpa [#allocation6], 0  ;;  %s286_s18 = smov [#allocation4]   ;;  %s287_s20 = smov [#allocation7]  }
   0x3   :  { %s20_s19 = sshll.u32 %s286_s18, 4  ;;  %s29_s21 = sshll.u32 %s287_s20, 4  ;;  %s21_s19 = int_to_ptr.vmem [resolvable:$true] %s20_s19  ;;  %s323_s21 = int_to_ptr.vmem [resolvable:$true] %s29_s21 }
   0x4   :  { %s214_s24 = scalar_lea.hbm %s376_s1, 64 }
   0x5   :  { %p215_p0 = scmp.ne.s32.totalorder %s376_s1, %s214_s24  ;;  %p218_p1 = scmp.lt.u32.totalorder %s214_s24, %s376_s1 }
   0x7   :  { %p220_p2 = pnand %p218_p1, %p215_p0 }
   0x9   :  { %223 = shalt.err (!%p220_p2)
}
   0xa   :  { %s224_s29 = scalar_lea.vmem %s21_s19, 64  ;;  %p229_p4 = scmp.lt.s32.totalorder %s21_s19, %s21_s19 }
   0xb   :  { %p225_p3 = scmp.ne.s32.totalorder %s21_s19, %s224_s29  ;;  %p230_p5 = scmp.lt.s32.totalorder %s224_s29, %s224_s29 }
   0xd   :  { %p231_p6 = por %p230_p5, %p229_p4 }
   0xf   :  { %p232_p7 = pnand %p231_p6, %p225_p3 }
  0x11   :  { %235 = shalt.err (!%p232_p7)
}
  0x12   :  { %23 = dma.hbm_to_vmem [thread:$0]  %s376_s1, 64, %s21_s19, [#allocation5]  }
  0x13   :  { %s236_s9 = scalar_lea.hbm %s377_s2, 256 }
  0x14   :  { %p237_p8 = scmp.ne.s32.totalorder %s377_s2, %s236_s9  ;;  %p240_p9 = scmp.lt.u32.totalorder %s236_s9, %s377_s2 }
  0x16   :  { %p242_p10 = pnand %p240_p9, %p237_p8 }
  0x18   :  { %245 = shalt.err (!%p242_p10)
}
  0x19   :  { %s246_s14 = scalar_lea.vmem %s323_s21, 256  ;;  %p251_p12 = scmp.lt.s32.totalorder %s323_s21, %s323_s21 }
  0x1a   :  { %p247_p11 = scmp.ne.s32.totalorder %s323_s21, %s246_s14  ;;  %p252_p13 = scmp.lt.s32.totalorder %s246_s14, %s246_s14 }
  0x1c   :  { %p253_p0 = por %p252_p13, %p251_p12 }
  0x1e   :  { %p254_p1 = pnand %p253_p0, %p247_p11 }
  0x20   :  { %257 = shalt.err (!%p254_p1)
}
  0x21   :  { %s288_s1 = smov 64   ;;  %s289_s15 = smov 4  }
  0x22   :  { %35 = dma.hbm_to_vmem [thread:$0]  %s377_s2, 256, %s323_s21, [#allocation8], %s288_s1, %s288_s1, %s289_s15  }
  0x23   :  { %280 = dma.done.wait [#allocation5], 64  }
  0x24   :  { %281 = vsyncadd [#allocation5], 4294967232 }
  0x25   :  { %282 = dma.done.wait [#allocation8], 256  }
  0x26   :  { %283 = vsyncadd [#allocation8], 4294967040  ;;  %v290_v0 = vmov 0.0   ;;  %vm291_vm0 = vmmov 0   ;;  %v210_v1 = vld [vmem:[#allocation7] sm:$0xff]   ;;  %v211_v2 = vld [vmem:[#allocation7 + $0x8] sm:$0xff]   ;;  %v150_v4 = vlaneseq  ;;  %v157_v10 = vstv %s375_s0 }
  0x27   :  { %195 = vmatprep.subr.bf16.mxu0 %v290_v0  ;;  %199 = vmatprep.mubr.msk.bf16.mxu0 %vm291_vm0, %v290_v0  ;;  %v47_v3 = vld [vmem:[#allocation4] sm:$0xf]  ;;  %vm64_vm1 = vcmask 261120   ;;  %s292_s22 = smov [#allocation9]  }
  0x28   :  { %196 = vmatpush3.bf16.msra.mxu0 %v210_v1  ;;  %v151_v5 = vshrl.u32 %v150_v4, 7  ;;  %v153_v6 = vand.u32 127, %v150_v4  ;;  %v190_v45 = vld [vmem:[%s378_s3] ss:$0 sm:$0xff]  ;;  %s177_s23 = sshll.u32 %s292_s22, 4  ;;  %s178_s23 = int_to_ptr.vmem [resolvable:$true] %s177_s23 }
  0x29   :  { %197 = vmatprep.subr.bf16.mxu0 %v290_v0  ;;  %v191_v47 = vld [vmem:[%s379_s4] ss:$0 sm:$0xff]  ;;  %s258_s24 = scalar_lea.vmem %s178_s23, 128  ;;  %p263_p3 = scmp.lt.s32.totalorder %s178_s23, %s178_s23 }
  0x2a   :  { %v154_v7 = vmul.u32 112755, %v151_v5  ;;  %v155_v8 = vmul.u32 2246822507, %v153_v6  ;;  %p259_p2 = scmp.ne.s32.totalorder %s178_s23, %s258_s24  ;;  %p264_p4 = scmp.lt.s32.totalorder %s258_s24, %s258_s24 }
  0x2c   :  { %198 = vmatpush3.bf16.msra.mxu0 %v211_v2  ;;  %v156_v9 = vadd.s32 %v155_v8, %v154_v7  ;;  %p265_p5 = por %p264_p4, %p263_p3 }
  0x2e   :  { %v158_v12 = vadd.s32 %v157_v10, %v156_v9  ;;  %p266_p6 = pnand %p265_p5, %p259_p2 }
  0x2f   :  { %200 = vmatmul.mubr.msk.bf16.vlgmr.msra.gmra.mrb[0].mxu0 %vm64_vm1, %v47_v3 }
  0x30   :  { %v159_v20 = vshrl.u32 %v158_v12, 16 }
  0x32   :  { %v160_v25 = vxor.u32 %v159_v20, %v158_v12 }
  0x34   :  { %v161_v30 = vmul.u32 2146121005, %v160_v25 }
  0x36   :  { %v162_v35 = vshrl.u32 %v161_v30, 15 }
  0x38   :  { %v163_v38 = vxor.u32 %v162_v35, %v161_v30 }
  0x3a   :  { %v164_v40 = vmul.u32 2221713035, %v163_v38 }
  0x3c   :  { %v165_v41 = vshrl.u32 %v164_v40, 16 }
  0x3e   :  { %v166_v43 = vxor.u32 %v165_v41, %v164_v40 }
  0x40   :  { %vm167_vm2 = vcmp.ge.u32.totalorder %v166_v43, 429496730 }
  0x41   :  { %v168_v50 = vsel %vm167_vm2, 1.1111112, %v290_v0 }
 0x102   :  { %v102_v11 = vpop.f32.mrb[0].mxu0 }
 0x103   :  { %v108_v13 = vrot.slane %v102_v11, 4  ;;  %v115_v14 = vmul.f32 %v102_v11, %v102_v11  ;;  %v201_v15 = vpop.f32.mrb[1].mxu0 }
 0x104   :  { %v105_v16 = vpop.f32.mrb[2].mxu0 }
 0x105   :  { %v109_v17 = vadd.f32 %v108_v13, %v102_v11  ;;  %v116_v18 = vrot.slane %v115_v14, 4  ;;  %v202_v19 = vpop.f32.mrb[3].mxu0 }
 0x107   :  { %v110_v21 = vrot.slane %v109_v17, 2  ;;  %v117_v22 = vadd.f32 %v116_v18, %v115_v14 }
 0x109   :  { %v111_v23 = vadd.f32 %v110_v21, %v109_v17  ;;  %v118_v24 = vrot.slane %v117_v22, 2 }
 0x10b   :  { %v112_v26 = vrot.slane %v111_v23, 1  ;;  %v119_v27 = vadd.f32 %v118_v24, %v117_v22 }
 0x10d   :  { %v113_v28 = vadd.f32 %v112_v26, %v111_v23  ;;  %v120_v29 = vrot.slane %v119_v27, 1 }
 0x10f   :  { %v114_v31 = vmul.f32 0.125, %v113_v28  ;;  %v121_v32 = vadd.f32 %v120_v29, %v119_v27 }
 0x111   :  { %v122_v33 = vmul.f32 0.125, %v121_v32  ;;  %v123_v34 = vmul.f32 %v114_v31, %v114_v31  ;;  %v126_v42 = vsub.f32 %v102_v11, %v114_v31 }
 0x113   :  { %v124_v36 = vsub.f32 %v122_v33, %v123_v34 }
 0x115   :  { %v125_v37 = vmax.f32 %v124_v36, 0.0 }
 0x117   :  { %v127_v39 = vadd.f32 1e-05, %v125_v37 }
 0x119   :  { %212 = vrsqrt.f32 %v127_v39 }
 0x123   :  { %v213_v44 = vpop.eup %212 }
 0x124   :  { %v129_v46 = vmul.f32 %v213_v44, %v126_v42 }
 0x126   :  { %v137_v48 = vmul.f32 %v190_v45, %v129_v46 }
 0x128   :  { %v145_v49 = vadd.f32 %v191_v47, %v137_v48 }
 0x12a   :  { %v146_v51 = vmax.f32 %v145_v49, 0.0 }
 0x12c   :  { %v169_v52 = vmul.f32 %v168_v50, %v146_v51 }
 0x12e   :  { %170 = vst [vmem:[#allocation9] sm:$0xff] %v169_v52 }
 0x12f   :  { %269 = shalt.err (!%p266_p6)
}
 0x130   :  { %s270_s4 = scalar_lea.hbm %s380_s5, 128 }
 0x131   :  { %p271_p7 = scmp.ne.s32.totalorder %s380_s5, %s270_s4  ;;  %p274_p8 = scmp.lt.u32.totalorder %s270_s4, %s380_s5 }
 0x133   :  { %p276_p9 = pnand %p274_p8, %p271_p7 }
 0x135   :  { %279 = shalt.err (!%p276_p9)
}
 0x136   :  { %180 = dma.vmem_to_hbm [thread:$0]  %s178_s23, 128, %s380_s5, [#allocation6]  }
 0x137   :  { %284 = dma.done.wait [#allocation6], 128  }
 0x138   :  { %285 = vsyncadd [#allocation6], 4294967168 }
 0x139   :  { %184 = vsyncpa [#allocation5], 1 }
 0x13a   :  { %185 = vsyncpa [#allocation8], 1 }
 0x13b   :  { %186 = vsyncpa [#allocation6], 1 }

</bundles_post_ra>
